<compile_context>
chip_gen: v6e
topology: v6e:2x2x1
jax: 0.10.0
libtpu: 0.0.40
codegen_flags: <defaults>
</compile_context>

<pallas_src>
import functools

import jax
import jax.numpy as jnp
from jax import lax
from jax.experimental import pallas as pl
from jax.experimental.pallas import tpu as pltpu

_EPS = 1e-8


def _koleo_kernel(q_ref, k_ref, out_ref, qn_ref, max_ref, *, n_valid):
    """One (row-tile i, key-tile j) step of the KoLeo forward pass.

    q_ref   : (TM, D) query rows, native dtype (block of x indexed by i)
    k_ref   : (TN, D) key rows,   native dtype (block of x indexed by j)
    out_ref : (TM, 1) f32 per-row -log(nearest-neighbour distance + eps)
    qn_ref  : (TM, D) scratch: L2-normalized query rows in the MXU dtype
    max_ref : (TM, 1) scratch: running row-max of the masked gram matrix
    """
    i = pl.program_id(0)
    j = pl.program_id(1)
    last_j = pl.num_programs(1) - 1

    tm = q_ref.shape[0]
    tn = k_ref.shape[0]
    eps = jnp.float32(_EPS)

    # --- first key step for this row tile: normalize query rows once, cache in
    #     VMEM scratch, reset the running max (below any achievable dot >= -1).
    @pl.when(j == 0)
    def _init():
        q = q_ref[...].astype(jnp.float32)
        # F.normalize: x / max(||x||, eps)  ==  x * rsqrt(max(||x||^2, eps^2))
        q_inv = lax.rsqrt(
            jnp.maximum(jnp.sum(q * q, axis=-1, keepdims=True), eps * eps))
        qn_ref[...] = (q * q_inv).astype(qn_ref.dtype)
        max_ref[...] = jnp.full(max_ref.shape, -3.0, dtype=max_ref.dtype)

    # --- normalize the key tile (f32 element-wise math, MXU-dtype operands).
    k = k_ref[...].astype(jnp.float32)
    k_inv = lax.rsqrt(
        jnp.maximum(jnp.sum(k * k, axis=-1, keepdims=True), eps * eps))
    kn = (k * k_inv).astype(qn_ref.dtype)

    # --- gram tile on the MXU: contract the feature dim directly (no transpose).
    dot = lax.dot_general(qn_ref[...], kn, (((1,), (1,)), ((), ())),
                          preferred_element_type=jnp.float32)       # (TM, TN)

    # --- mask padded key columns (code only generated when padding exists).
    if n_valid % tn != 0:
        col = lax.broadcasted_iota(jnp.int32, (tm, tn), 1) + j * tn
        dot = jnp.where(col < n_valid, dot, jnp.float32(-3.0))

    # --- online row max.  Off-diagonal tiles skip the iota/compare/select.
    @pl.when(i != j)
    def _off_diag():
        max_ref[...] = jnp.maximum(max_ref[...],
                                   jnp.max(dot, axis=1, keepdims=True))

    # Diagonal tiles: exclude self-similarity (torch's fill_diagonal_(-1)).
    # Requires TM == TN (enforced in the wrapper).
    @pl.when(i == j)
    def _diag():
        r = lax.broadcasted_iota(jnp.int32, (tm, tn), 0)
        c = lax.broadcasted_iota(jnp.int32, (tm, tn), 1)
        d = jnp.where(r == c, jnp.float32(-1.0), dot)
        max_ref[...] = jnp.maximum(max_ref[...],
                                   jnp.max(d, axis=1, keepdims=True))

    # --- finalize this row tile: distance from the max dot product, then -log.
    @pl.when(j == last_j)
    def _finalize():
        m = max_ref[...]
        dist = jnp.sqrt(jnp.maximum(2.0 - 2.0 * m, 0.0))
        out_ref[...] = -jnp.log(dist + eps)


def _round_up(x, m):
    return (x + m - 1) // m * m


def koleo_loss(x, *, tile=256, mm_dtype=jnp.bfloat16):
    """KoLeo loss of a (N, D) batch of vectors.  Returns a scalar float32.

    tile     : square gram-tile size (multiple of 8; 256 feeds the v6e/v7x MXU).
    mm_dtype : MXU operand dtype for the gram matrix (bf16 default, f32 for
               bit-closer parity with the PyTorch reference).
    """
    n, d = x.shape
    if n < 2:
        raise ValueError("KoLeo loss needs at least 2 samples")

    # Square tiles, multiple of 8 sublanes, never larger than the padded input.
    tile = max(8, _round_up(min(tile, n), 8))
    n_pad = _round_up(n, tile)
    if n_pad != n:
        x = jnp.pad(x, ((0, n_pad - n), (0, 0)))
    n_tiles = n_pad // tile
    grid = (n_tiles, n_tiles)  # (query-row tiles [parallel], key tiles [arbitrary])

    kernel = functools.partial(_koleo_kernel, n_valid=n)

    neg_log = pl.pallas_call(
        kernel,
        out_shape=jax.ShapeDtypeStruct((n_pad, 1), jnp.float32),
        grid=grid,
        in_specs=[
            pl.BlockSpec((tile, d), lambda i, j: (i, 0)),   # query rows (native dtype)
            pl.BlockSpec((tile, d), lambda i, j: (j, 0)),   # key rows   (native dtype)
        ],
        out_specs=pl.BlockSpec((tile, 1), lambda i, j: (i, 0)),
        scratch_shapes=[
            pltpu.VMEM((tile, d), mm_dtype),      # normalized query rows
            pltpu.VMEM((tile, 1), jnp.float32),   # running row max of the gram
        ],
        compiler_params=pltpu.CompilerParams(
            dimension_semantics=("parallel", "arbitrary"),
            vmem_limit_bytes=48 * 1024 * 1024,    # fits v7x's 64 MiB physical VMEM
        ),
    )(x, x)

    # Tiny O(N) epilogue outside the kernel: drop padded rows, take the mean.
    return jnp.mean(neg_log[:n, 0])


def _koleo_reference(x, eps=_EPS):
    """Pure-JAX f32 reference matching the PyTorch module."""
    x = x.astype(jnp.float32)
    norm = jnp.sqrt(jnp.sum(x * x, axis=-1, keepdims=True))
    xn = x / jnp.maximum(norm, eps)
    dot = xn @ xn.T
    dot = jnp.where(jnp.eye(x.shape[0], dtype=bool), -1.0, dot)
    idx = jnp.argmax(dot, axis=1)
    diff = xn - xn[idx] + eps
    dist = jnp.sqrt(jnp.sum(diff * diff, axis=-1))
    return -jnp.mean(jnp.log(dist + eps))


if __name__ == "__main__":
    key = jax.random.PRNGKey(0)
    # Small (N, D) input consistent with the module's 2-D x (seq=8, hidden=32).
    x = jax.random.normal(key, (8, 32), dtype=jnp.float32)

    loss = koleo_loss(x)
    jax.block_until_ready(loss)
    assert loss.shape == ()
    assert bool(jnp.isfinite(loss))
    assert bool(jnp.abs(loss - _koleo_reference(x)) < 3e-2), (
        float(loss), float(_koleo_reference(x)))

    # Exercise the tiled / padded path: N not a tile multiple, bf16 input, 2x2 grid.
    x2 = jax.random.normal(jax.random.PRNGKey(1), (13, 32), dtype=jnp.bfloat16)
    loss2 = koleo_loss(x2, tile=8)
    jax.block_until_ready(loss2)
    assert bool(jnp.isfinite(loss2))
    assert bool(jnp.abs(loss2 - _koleo_reference(x2)) < 5e-2), (
        float(loss2), float(_koleo_reference(x2)))

    print("KERNEL_OK")
</pallas_src>

<mosaic_0001>
module attributes {stable_mosaic.version = 11 : i64} {
  func.func @_koleo_kernel(%arg0: i32, %arg1: i32, %arg2: memref<8x32xf32, #tpu.memory_space<vmem>>, %arg3: memref<8x32xf32, #tpu.memory_space<vmem>>, %arg4: memref<8x1xf32, #tpu.memory_space<vmem>>, %arg5: memref<8x32xbf16, #tpu.memory_space<vmem>>, %arg6: memref<8x1xf32, #tpu.memory_space<vmem>>) attributes {dimension_semantics = [#tpu.dimension_semantics<parallel>, #tpu.dimension_semantics<arbitrary>], iteration_bounds = array<i64: 1, 1>, scalar_prefetch = 0 : i64, scratch_operands = 2 : i64, tpu.core_type = #tpu.core_type<tc>, window_params = [{transform_indices = @transform_0, window_bounds = array<i64: 8, 32>}, {transform_indices = @transform_1, window_bounds = array<i64: 8, 32>}, {transform_indices = @transform_2, window_bounds = array<i64: 8, 1>}]} {
    %c0_i32 = arith.constant 0 : i32
    %0 = arith.cmpi eq, %arg1, %c0_i32 : i32
    %1 = arith.extui %0 : i1 to i32
    %cst = arith.constant 9.99999993E-9 : f32
    %c0_i32_0 = arith.constant 0 : i32
    %2 = arith.cmpi ne, %1, %c0_i32_0 : i32
    scf.if %2 {
      %c0_13 = arith.constant 0 : index
      %c0_14 = arith.constant 0 : index
      %25 = vector.load %arg2[%c0_13, %c0_14] : memref<8x32xf32, #tpu.memory_space<vmem>>, vector<8x32xf32>
      %26 = arith.mulf %25, %25 : vector<8x32xf32>
      %cst_15 = arith.constant dense<0.000000e+00> : vector<8xf32>
      %27 = vector.multi_reduction <add>, %26, %cst_15 [1] : vector<8x32xf32> to vector<8xf32>
      %28 = vector.shape_cast %27 : vector<8xf32> to vector<8x1xf32>
      %29 = arith.mulf %cst, %cst : f32
      %30 = vector.broadcast %29 : f32 to vector<8x1xf32>
      %31 = arith.maximumf %28, %30 : vector<8x1xf32>
      %32 = math.rsqrt %31 : vector<8x1xf32>
      %33 = vector.broadcast %32 : vector<8x1xf32> to vector<8x32xf32>
      %34 = arith.mulf %25, %33 : vector<8x32xf32>
      %35 = arith.truncf %34 : vector<8x32xf32> to vector<8x32xbf16>
      %c0_16 = arith.constant 0 : index
      %c0_17 = arith.constant 0 : index
      %36 = vector.load %arg5[%c0_16, %c0_17] : memref<8x32xbf16, #tpu.memory_space<vmem>>, vector<8x32xbf16>
      tpu.vector_store %arg5[%c0_16, %c0_17], %35 {strides = array<i32>} : memref<8x32xbf16, #tpu.memory_space<vmem>>, vector<8x32xbf16>,
      %cst_18 = arith.constant -3.000000e+00 : f32
      %37 = vector.broadcast %cst_18 : f32 to vector<8x1xf32>
      %c0_19 = arith.constant 0 : index
      %c0_20 = arith.constant 0 : index
      %38 = vector.load %arg6[%c0_19, %c0_20] : memref<8x1xf32, #tpu.memory_space<vmem>>, vector<8x1xf32>
      tpu.vector_store %arg6[%c0_19, %c0_20], %37 {strides = array<i32>} : memref<8x1xf32, #tpu.memory_space<vmem>>, vector<8x1xf32>,
    } else {
    }
    %c0 = arith.constant 0 : index
    %c0_1 = arith.constant 0 : index
    %3 = vector.load %arg3[%c0, %c0_1] : memref<8x32xf32, #tpu.memory_space<vmem>>, vector<8x32xf32>
    %4 = arith.mulf %3, %3 : vector<8x32xf32>
    %cst_2 = arith.constant dense<0.000000e+00> : vector<8xf32>
    %5 = vector.multi_reduction <add>, %4, %cst_2 [1] : vector<8x32xf32> to vector<8xf32>
    %6 = vector.shape_cast %5 : vector<8xf32> to vector<8x1xf32>
    %cst_3 = arith.constant 9.99999993E-9 : f32
    %cst_4 = arith.constant 9.99999993E-9 : f32
    %7 = arith.mulf %cst_3, %cst_4 : f32
    %8 = vector.broadcast %7 : f32 to vector<8x1xf32>
    %9 = arith.maximumf %6, %8 : vector<8x1xf32>
    %10 = math.rsqrt %9 : vector<8x1xf32>
    %11 = vector.broadcast %10 : vector<8x1xf32> to vector<8x32xf32>
    %12 = arith.mulf %3, %11 : vector<8x32xf32>
    %13 = arith.truncf %12 : vector<8x32xf32> to vector<8x32xbf16>
    %c0_5 = arith.constant 0 : index
    %c0_6 = arith.constant 0 : index
    %14 = vector.load %arg5[%c0_5, %c0_6] : memref<8x32xbf16, #tpu.memory_space<vmem>>, vector<8x32xbf16>
    %cst_7 = arith.constant dense<0.000000e+00> : vector<8x8xf32>
    %15 = tpu.matmul %14, %13, %cst_7 {dimension_numbers = #tpu.dot_dimension_numbers<[1], [1], [0], [0], [0, 0, 1, 0], [], []>} : vector<8x32xbf16>, vector<8x32xbf16>, vector<8x8xf32> -> vector<8x8xf32>
    %16 = arith.cmpi ne, %arg0, %arg1 : i32
    %17 = arith.extui %16 : i1 to i32
    %c0_i32_8 = arith.constant 0 : i32
    %18 = arith.cmpi ne, %17, %c0_i32_8 : i32
    scf.if %18 {
      %c0_13 = arith.constant 0 : index
      %c0_14 = arith.constant 0 : index
      %25 = vector.load %arg6[%c0_13, %c0_14] : memref<8x1xf32, #tpu.memory_space<vmem>>, vector<8x1xf32>
      %cst_15 = arith.constant dense<0xFF800000> : vector<8xf32>
      %26 = vector.multi_reduction <maximumf>, %15, %cst_15 [1] : vector<8x8xf32> to vector<8xf32>
      %27 = vector.shape_cast %26 : vector<8xf32> to vector<8x1xf32>
      %28 = arith.maximumf %25, %27 : vector<8x1xf32>
      %c0_16 = arith.constant 0 : index
      %c0_17 = arith.constant 0 : index
      %29 = vector.load %arg6[%c0_16, %c0_17] : memref<8x1xf32, #tpu.memory_space<vmem>>, vector<8x1xf32>
      tpu.vector_store %arg6[%c0_16, %c0_17], %28 {strides = array<i32>} : memref<8x1xf32, #tpu.memory_space<vmem>>, vector<8x1xf32>,
    } else {
    }
    %19 = arith.cmpi eq, %arg0, %arg1 : i32
    %20 = arith.extui %19 : i1 to i32
    %c0_i32_9 = arith.constant 0 : i32
    %21 = arith.cmpi ne, %20, %c0_i32_9 : i32
    scf.if %21 {
      %25 = tpu.iota {dimensions = array<i32: 0>} : vector<8x8xi32>
      %26 = tpu.iota {dimensions = array<i32: 1>} : vector<8x8xi32>
      %27 = arith.cmpi eq, %25, %26 : vector<8x8xi32>
      %cst_13 = arith.constant -1.000000e+00 : f32
      %28 = vector.broadcast %cst_13 : f32 to vector<8x8xf32>
      %29 = arith.select %27, %28, %15 : vector<8x8xi1>, vector<8x8xf32>
      %c0_14 = arith.constant 0 : index
      %c0_15 = arith.constant 0 : index
      %30 = vector.load %arg6[%c0_14, %c0_15] : memref<8x1xf32, #tpu.memory_space<vmem>>, vector<8x1xf32>
      %cst_16 = arith.constant dense<0xFF800000> : vector<8xf32>
      %31 = vector.multi_reduction <maximumf>, %29, %cst_16 [1] : vector<8x8xf32> to vector<8xf32>
      %32 = vector.shape_cast %31 : vector<8xf32> to vector<8x1xf32>
      %33 = arith.maximumf %30, %32 : vector<8x1xf32>
      %c0_17 = arith.constant 0 : index
      %c0_18 = arith.constant 0 : index
      %34 = vector.load %arg6[%c0_17, %c0_18] : memref<8x1xf32, #tpu.memory_space<vmem>>, vector<8x1xf32>
      tpu.vector_store %arg6[%c0_17, %c0_18], %33 {strides = array<i32>} : memref<8x1xf32, #tpu.memory_space<vmem>>, vector<8x1xf32>,
    } else {
    }
    %c0_i32_10 = arith.constant 0 : i32
    %22 = arith.cmpi eq, %arg1, %c0_i32_10 : i32
    %23 = arith.extui %22 : i1 to i32
    %cst_11 = arith.constant 9.99999993E-9 : f32
    %c0_i32_12 = arith.constant 0 : i32
    %24 = arith.cmpi ne, %23, %c0_i32_12 : i32
    scf.if %24 {
      %c0_13 = arith.constant 0 : index
      %c0_14 = arith.constant 0 : index
      %25 = vector.load %arg6[%c0_13, %c0_14] : memref<8x1xf32, #tpu.memory_space<vmem>>, vector<8x1xf32>
      %cst_15 = arith.constant 2.000000e+00 : f32
      %26 = vector.broadcast %cst_15 : f32 to vector<8x1xf32>
      %27 = arith.mulf %26, %25 : vector<8x1xf32>
      %cst_16 = arith.constant 2.000000e+00 : f32
      %28 = vector.broadcast %cst_16 : f32 to vector<8x1xf32>
      %29 = arith.subf %28, %27 : vector<8x1xf32>
      %cst_17 = arith.constant 0.000000e+00 : f32
      %30 = vector.broadcast %cst_17 : f32 to vector<8x1xf32>
      %31 = arith.maximumf %29, %30 : vector<8x1xf32>
      %32 = math.sqrt %31 : vector<8x1xf32>
      %33 = vector.broadcast %cst_11 : f32 to vector<8x1xf32>
      %34 = arith.addf %32, %33 : vector<8x1xf32>
      %35 = math.log %34 : vector<8x1xf32>
      %cst_18 = arith.constant 0.000000e+00 : f32
      %36 = vector.broadcast %cst_18 : f32 to vector<8x1xf32>
      %37 = arith.subf %36, %35 : vector<8x1xf32>
      %c0_19 = arith.constant 0 : index
      %c0_20 = arith.constant 0 : index
      %38 = vector.load %arg4[%c0_19, %c0_20] : memref<8x1xf32, #tpu.memory_space<vmem>>, vector<8x1xf32>
      tpu.vector_store %arg4[%c0_19, %c0_20], %37 {strides = array<i32>} : memref<8x1xf32, #tpu.memory_space<vmem>>, vector<8x1xf32>,
    } else {
    }
    return
  }
  func.func @transform_0(%arg0: i32, %arg1: i32) -> (i32, i32) {
    %c0_i32 = arith.constant 0 : i32
    %c0_i32_0 = arith.constant 0 : i32
    return %arg0, %c0_i32 : i32, i32
  }
  func.func @transform_1(%arg0: i32, %arg1: i32) -> (i32, i32) {
    %c0_i32 = arith.constant 0 : i32
    %c0_i32_0 = arith.constant 0 : i32
    return %arg1, %c0_i32 : i32, i32
  }
  func.func @transform_2(%arg0: i32, %arg1: i32) -> (i32, i32) {
    %c0_i32 = arith.constant 0 : i32
    %c0_i32_0 = arith.constant 0 : i32
    return %arg0, %c0_i32 : i32, i32
  }
}

</mosaic_0001>

<bundles_post_ra>
// kernel: tpu_custom_call.1
= control target key start
LH: loop header
LB: loop body
LE: loop exit
PB: predicated region body
PF: predicated region fallthrough
CT: control target
= control target key end

     0   :  { %7 = vsyncpa [#allocation5], 0  ;;  %s269_s0 = inlined_call_operand.hbm [shape: f32[8,32], index: 0, kind: input, shape index: {}]   ;;  %s270_s1 = inlined_call_operand.hbm [shape: f32[8,32], index: 1, kind: input, shape index: {}]   ;;  %s271_s2 = inlined_call_operand.vmem [shape: f32[8,1], index: 2, kind: output, shape index: {}]  }
   0x1   :  { %8 = vsyncpa [#allocation7], 0  ;;  %s233_s9 = smov [#allocation4]   ;;  %s234_s11 = smov [#allocation6]  }
   0x2   :  { %s15_s10 = sshll.u32 %s233_s9, 4  ;;  %s25_s12 = sshll.u32 %s234_s11, 4  ;;  %s16_s10 = int_to_ptr.vmem [resolvable:$true] %s15_s10  ;;  %s26_s12 = int_to_ptr.vmem [resolvable:$true] %s25_s12 }
   0x3   :  { %s197_s13 = scalar_lea.vmem %s16_s10, 128  ;;  %p202_p1 = scmp.lt.s32.totalorder %s16_s10, %s16_s10 }
   0x4   :  { %p198_p0 = scmp.ne.s32.totalorder %s16_s10, %s197_s13  ;;  %p203_p2 = scmp.lt.s32.totalorder %s197_s13, %s197_s13 }
   0x6   :  { %p204_p3 = por %p203_p2, %p202_p1 }
   0x8   :  { %p205_p4 = pnand %p204_p3, %p198_p0 }
   0xa   :  { %208 = shalt.err (!%p205_p4)
}
   0xb   :  { %18 = dma.hbm_to_vmem [thread:$0]  %s269_s0, 128, %s16_s10, [#allocation5]  }
   0xc   :  { %s217_s16 = scalar_lea.vmem %s26_s12, 128  ;;  %p222_p6 = scmp.lt.s32.totalorder %s26_s12, %s26_s12 }
   0xd   :  { %p218_p5 = scmp.ne.s32.totalorder %s26_s12, %s217_s16  ;;  %p223_p7 = scmp.lt.s32.totalorder %s217_s16, %s217_s16 }
   0xf   :  { %p224_p8 = por %p223_p7, %p222_p6 }
  0x11   :  { %p225_p9 = pnand %p224_p8, %p218_p5 }
  0x13   :  { %228 = shalt.err (!%p225_p9)
}
  0x14   :  { %28 = dma.hbm_to_vmem [thread:$0]  %s270_s1, 128, %s26_s12, [#allocation7]  }
  0x15   :  { %229 = dma.done.wait [#allocation5], 128  }
  0x16   :  { %230 = vsyncadd [#allocation5], 4294967168 }
  0x17   :  { %231 = dma.done.wait [#allocation7], 128  }
  0x18   :  { %232 = vsyncadd [#allocation7], 4294967168  ;;  %v40_v0 = vld [vmem:[#allocation4] sm:$0xff]  ;;  %vm42_vm0 = vcmask 261120   ;;  %v54_v1 = vld [vmem:[#allocation6] sm:$0xff]  ;;  %v235_v6 = vmov 0.0   ;;  %v127_v20 = vlaneseq }
  0x19   :  { %v41_v2 = vmul.f32 %v40_v0, %v40_v0  ;;  %v55_v3 = vmul.f32 %v54_v1, %v54_v1  ;;  %170 = vmatprep.subr.bf16.mxu0 %v235_v6  ;;  %vm236_vm1 = vmmov 0   ;;  %vm50_vm2 = vcmask 257024  }
  0x1a   :  { %172 = vmatprep.mubr.msk.bf16.mxu0 %vm236_vm1, %v235_v6  ;;  %vm52_vm3 = vcmask 7168   ;;  %v237_v19 = vmov -3.0   ;;  %v128_v21 = vshrl.u32 %v127_v20, 7  ;;  %v130_v22 = vand.u32 127, %v127_v20 }
  0x1b   :  { %v43_v4 = vsel %vm42_vm0, %v41_v2, 0.0  ;;  %v57_v5 = vsel %vm42_vm0, %v55_v3, 0.0  ;;  %53 = vst.msk [vmem:[#allocation3] sm:$0xff] %vm52_vm3, %v237_v19  ;;  %vm134_vm5 = vcmask 64512  }
  0x1c   :  { %44 = vadd.xlane.f32.xlu0 %v43_v4  ;;  %vm131_vm4 = vcmp.eq.s32.totalorder %v128_v21, %v130_v22 }
  0x20   :  { %58 = vadd.xlane.f32.xlu0 %v57_v5 }
  0x22   :  { %v133_v29 = vld [vmem:[#allocation3] sm:$0xff] }
  0xa5   :  { %v45_v7 = vpop.xlane.xlu0 %44 }
  0xa6   :  { %v46_v8 = vmax.f32 %v45_v7, 1e-16 }
  0xa8   :  { %181 = vrsqrt.f32 %v46_v8 }
  0xa9   :  { %v59_v9 = vpop.xlane.xlu0 %58 }
  0xaa   :  { %v60_v10 = vmax.f32 %v59_v9, 1e-16 }
  0xac   :  { %183 = vrsqrt.f32 %v60_v10 }
  0xb5   :  { %v182_v11 = vpop.eup %181 }
  0xb6   :  { %v48_v12 = vmul.f32 %v182_v11, %v40_v0 }
  0xb8   :  { %v49_v13 = vpack.c.bf16 %v48_v12, %v48_v12 }
  0xb9   :  { %v184_v14 = vpop.eup %183 }
  0xba   :  { %51 = vst.msk [vmem:[#allocation2] sm:$0xf] %vm50_vm2, %v49_v13  ;;  %v62_v15 = vmul.f32 %v184_v14, %v54_v1 }
  0xbc   :  { %v63_v16 = vpack.c.bf16 %v62_v15, %v62_v15 }
  0xbe   :  { %v69_v17 = vsel %vm42_vm0, %v63_v16, 0 }
  0xbf   :  { %171 = vmatpush3.bf16.xpose.msra.mxu0 %v69_v17 }
  0xc1   :  { %v64_v18 = vld [vmem:[#allocation2] sm:$0xf] }
  0xc6   :  { %173 = vmatmul.mubr.msk.bf16.vlgmr.msra.gmra.mxu0 %vm42_vm0, %v64_v18 }
 0x186   :  { %v105_v23 = vpop.f32.mrf.mxu0 }
 0x187   :  { %v132_v24 = vsel %vm131_vm4, -1.0, %v105_v23 }
 0x188   :  { %v174_v25 = vpop.f32.mrf.mxu0  ;;  %v135_v26 = vsel %vm134_vm5, %v132_v24, -inf }
 0x189   :  { %136 = vmax.xlane.f32.xlu1 %v135_v26 }
 0x18a   :  { %v108_v27 = vpop.f32.mrf.mxu0 }
 0x18c   :  { %v175_v28 = vpop.f32.mrf.mxu0 }
 0x212   :  { %v137_v30 = vpop.xlane.xlu1 %136 }
 0x213   :  { %v138_v31 = vmax.f32 %v133_v29, %v137_v30 }
 0x215   :  { %140 = vst.msk [vmem:[#allocation3] sm:$0xff] %vm52_vm3, %v138_v31 }
 0x21c   :  { %v144_v32 = vld [vmem:[#allocation3] sm:$0xff] }
 0x21d   :  { %v145_v33 = vmul.f32 2.0, %v144_v32 }
 0x21f   :  { %v146_v34 = vsub.f32 2.0, %v145_v33 }
 0x221   :  { %v147_v35 = vmax.f32 %v146_v34, 0.0 }
 0x223   :  { %185 = vrsqrt.f32 %v147_v35  ;;  %vm150_vm6 = vcmp.eq.f32.partialorder %v147_v35, inf  ;;  %v153_v38 = vand.u32 2147483648, %v147_v35  ;;  %vm152_vm7 = vcmp.eq.f32.partialorder %v147_v35, 0.0 }
 0x230   :  { %v186_v36 = vpop.eup %185 }
 0x231   :  { %v149_v37 = vmul.f32 %v186_v36, %v147_v35 }
 0x233   :  { %v151_v39 = vsel %vm150_vm6, %v147_v35, %v149_v37 }
 0x234   :  { %v154_v40 = vsel %vm152_vm7, %v153_v38, %v151_v39 }
 0x235   :  { %v155_v41 = vadd.f32 1e-08, %v154_v40 }
 0x237   :  { %187 = vlog2.f32 %v155_v41 }
 0x244   :  { %v188_v42 = vpop.eup %187 }
 0x245   :  { %v157_v43 = vmul.f32 0.6931472, %v188_v42 }
 0x247   :  { %v158_v44 = vsub.f32 0.0, %v157_v43 }
 0x249   :  { %160 = vst.msk [vmem:[%s271_s2] sm:$0xff] %vm52_vm3, %v158_v44 }
 0x24a   :  { %165 = vsyncpa [#allocation5], 1 }
 0x24b   :  { %166 = vsyncpa [#allocation7], 1 }

</bundles_post_ra>
